<compile_context>
chip_gen: v7x
topology: tpu7x:2x2x1
jax: 0.10.0
libtpu: 0.0.40
codegen_flags: <defaults>
</compile_context>

<pallas_src>
import functools

import jax
import jax.numpy as jnp
from jax.experimental import pallas as pl
from jax.experimental.pallas import tpu as pltpu


# --------------------------------------------------------------------------- #
# Tiling helpers
# --------------------------------------------------------------------------- #
_LANE = 128
_MAX_TN = 512             # output-lane tile cap
_MAX_TK_SINGLE = 2048     # collapse K into a single tile up to this length
_TK_MULTI = 1024          # K tile for the multi-step reduction path
_VMEM_LIMIT_BYTES = 48 * 1024 * 1024   # < v7x 64 MiB physical, tiny on v5e/v6e


def _round_up(x, m):
    return ((x + m - 1) // m) * m


def _pad_k(k):
    """Padded K used by both param prep and the forward pass (must agree)."""
    k_pad = _round_up(k, _LANE)
    if k_pad > _MAX_TK_SINGLE:
        k_pad = _round_up(k, _TK_MULTI)
    return k_pad


def _tile_k(k_pad):
    return k_pad if k_pad <= _MAX_TK_SINGLE else _TK_MULTI


def _tile_n(n_pad):
    """Largest 128-multiple <= _MAX_TN that divides n_pad (n_pad is 128-aligned)."""
    best = _LANE
    t = _LANE
    while t <= min(n_pad, _MAX_TN):
        if n_pad % t == 0:
            best = t
        t += _LANE
    return best


def _tile_m(m):
    """Pick tm so M-padding waste stays small; cap at 512 to bound VMEM."""
    if m <= 512:
        return _round_up(m, 8)
    for cand in (512, 256, 128):
        if _round_up(m, cand) - m <= m // 8:
            return cand
    return 128


# --------------------------------------------------------------------------- #
# Kernels
# --------------------------------------------------------------------------- #
def _expert_kernel_fused_k(x_ref, w_ref, b_ref, o_ref):
    """Single K step: whole reduction in one MXU pass, no accumulator scratch.

    x_ref: (tm, K_pad)   f32 activations (cast to bf16 in-register)
    w_ref: (K_pad, tn)   bf16 weight, pre-transposed to [in, out]
    b_ref: (1, tn)       f32 bias
    o_ref: (tm, tn)      output tile
    """
    x = x_ref[...].astype(jnp.bfloat16)
    acc = jnp.dot(x, w_ref[...], preferred_element_type=jnp.float32)
    o_ref[...] = (acc + b_ref[...]).astype(o_ref.dtype)


def _expert_kernel_multi_k(x_ref, w_ref, b_ref, o_ref, acc_ref):
    """Large-K path: (M, N, K) grid with resident f32 accumulator over K.

    x_ref: (tm, tk), w_ref: (tk, tn) bf16, b_ref: (1, tn), acc_ref: (tm, tn) f32.
    """
    k = pl.program_id(2)

    @pl.when(k == 0)
    def _():
        acc_ref[...] = jnp.zeros_like(acc_ref)

    x = x_ref[...].astype(jnp.bfloat16)
    acc_ref[...] += jnp.dot(x, w_ref[...], preferred_element_type=jnp.float32)

    @pl.when(k == pl.num_programs(2) - 1)
    def _():
        # Bias added exactly once, in f32, fused into the final writeback.
        o_ref[...] = (acc_ref[...] + b_ref[...]).astype(o_ref.dtype)


# --------------------------------------------------------------------------- #
# Wrapper
# --------------------------------------------------------------------------- #
def prepare_expert_params(weight, bias):
    """One-time parameter prep (do this at init, NOT per forward call).

    weight: [out_features, in_features]  (PyTorch nn.Linear convention)
    bias:   [out_features]
    Returns (w_p, b_p): bf16 weight pre-transposed to [K_pad, N_pad] and f32
    bias as (1, N_pad), both lane-aligned so the kernel does unmasked stores
    and the forward path never re-pads or re-casts the parameters.
    """
    N, K = weight.shape
    K_pad = _pad_k(K)
    N_pad = _round_up(N, _LANE)

    w_kn = jnp.asarray(weight, jnp.float32).T.astype(jnp.bfloat16)      # [K, N]
    w_p = jnp.pad(w_kn, ((0, K_pad - K), (0, N_pad - N)))
    b_p = jnp.pad(jnp.asarray(bias, jnp.float32), (0, N_pad - N)).reshape(1, N_pad)
    return w_p, b_p


@functools.partial(jax.jit, static_argnames=("out_dim",))
def expert_forward(x, w_p, b_p, *, out_dim):
    """Equivalent of PyTorch nn.Linear(input_dim, output_dim)(x).

    x:    [batch, in_features] (f32)
    w_p:  [K_pad, N_pad] bf16   (from prepare_expert_params)
    b_p:  [1, N_pad] f32        (from prepare_expert_params)
    Returns [batch, out_dim] in x.dtype.
    """
    M, K = x.shape
    K_pad, N_pad = w_p.shape
    assert K_pad >= K and K_pad % _LANE == 0 and N_pad % _LANE == 0

    tm = _tile_m(M)
    tn = _tile_n(N_pad)
    tk = _tile_k(K_pad)
    M_pad = _round_up(M, tm)

    x_p = x if (M_pad == M and K_pad == K) else jnp.pad(
        x, ((0, M_pad - M), (0, K_pad - K)))

    if tk == K_pad:
        # --- single-K-step path: no accumulator, no reduction grid axis ---
        out = pl.pallas_call(
            _expert_kernel_fused_k,
            out_shape=jax.ShapeDtypeStruct((M_pad, N_pad), x.dtype),
            grid_spec=pltpu.PrefetchScalarGridSpec(
                num_scalar_prefetch=0,
                grid=(M_pad // tm, N_pad // tn),
                in_specs=[
                    pl.BlockSpec((tm, tk), lambda i, j: (i, 0)),   # x
                    pl.BlockSpec((tk, tn), lambda i, j: (0, j)),   # weight [K,N] bf16
                    pl.BlockSpec((1, tn), lambda i, j: (0, j)),    # bias
                ],
                out_specs=pl.BlockSpec((tm, tn), lambda i, j: (i, j)),
            ),
            compiler_params=pltpu.CompilerParams(
                dimension_semantics=("parallel", "parallel"),
                vmem_limit_bytes=_VMEM_LIMIT_BYTES,
            ),
        )(x_p, w_p, b_p)
    else:
        # --- large-K path: sequential reduction over K, f32 accumulator ---
        out = pl.pallas_call(
            _expert_kernel_multi_k,
            out_shape=jax.ShapeDtypeStruct((M_pad, N_pad), x.dtype),
            grid_spec=pltpu.PrefetchScalarGridSpec(
                num_scalar_prefetch=0,
                grid=(M_pad // tm, N_pad // tn, K_pad // tk),
                in_specs=[
                    pl.BlockSpec((tm, tk), lambda i, j, k: (i, k)),   # x
                    pl.BlockSpec((tk, tn), lambda i, j, k: (k, j)),   # weight [K,N]
                    pl.BlockSpec((1, tn), lambda i, j, k: (0, j)),    # bias
                ],
                out_specs=pl.BlockSpec((tm, tn), lambda i, j, k: (i, j)),
                scratch_shapes=[pltpu.VMEM((tm, tn), jnp.float32)],
            ),
            compiler_params=pltpu.CompilerParams(
                dimension_semantics=("parallel", "parallel", "arbitrary"),
                vmem_limit_bytes=_VMEM_LIMIT_BYTES,
            ),
        )(x_p, w_p, b_p)

    return out[:M, :out_dim]


# --------------------------------------------------------------------------- #
# Test
# --------------------------------------------------------------------------- #
if __name__ == "__main__":
    # Small shapes consistent with the module: batch=8, input_dim=32, output_dim=16
    batch, input_dim, output_dim = 8, 32, 16

    key = jax.random.PRNGKey(0)
    kx, kw, kb = jax.random.split(key, 3)

    x = jax.random.normal(kx, (batch, input_dim), dtype=jnp.float32)
    # Deterministic init mimicking nn.Linear's uniform(-1/sqrt(in), 1/sqrt(in))
    bound = 1.0 / (input_dim ** 0.5)
    weight = jax.random.uniform(kw, (output_dim, input_dim), jnp.float32, -bound, bound)
    bias = jax.random.uniform(kb, (output_dim,), jnp.float32, -bound, bound)

    # One-time param prep (bf16 cast + [K,N] transpose + lane padding).
    w_p, b_p = prepare_expert_params(weight, bias)

    y = expert_forward(x, w_p, b_p, out_dim=output_dim)
    jax.block_until_ready(y)
    assert y.shape == (batch, output_dim)

    # Reference matching the kernel's bf16-operand / f32-accumulate contract.
    y_ref_bf16 = (
        jnp.dot(x.astype(jnp.bfloat16), weight.T.astype(jnp.bfloat16),
                preferred_element_type=jnp.float32) + bias
    ).astype(x.dtype)
    assert jnp.allclose(y, y_ref_bf16, atol=1e-2, rtol=1e-2)

    # Looser check against exact f32 PyTorch-Linear semantics.
    y_ref_f32 = x @ weight.T + bias
    assert jnp.allclose(y, y_ref_f32, atol=5e-2, rtol=5e-2)

    print("KERNEL_OK")
</pallas_src>

<mosaic_0001>
module attributes {stable_mosaic.version = 11 : i64} {
  func.func @_expert_kernel_fused_k(%arg0: i32, %arg1: i32, %arg2: memref<8x128xf32, #tpu.memory_space<vmem>>, %arg3: memref<128x128xbf16, #tpu.memory_space<vmem>>, %arg4: memref<1x128xf32, #tpu.memory_space<vmem>>, %arg5: memref<8x128xf32, #tpu.memory_space<vmem>>) attributes {dimension_semantics = [#tpu.dimension_semantics<parallel>, #tpu.dimension_semantics<parallel>], iteration_bounds = array<i64: 1, 1>, scalar_prefetch = 0 : i64, scratch_operands = 0 : i64, tpu.core_type = #tpu.core_type<tc>, window_params = [{transform_indices = @transform_0, window_bounds = array<i64: 8, 128>}, {transform_indices = @transform_1, window_bounds = array<i64: 128, 128>}, {transform_indices = @transform_2, window_bounds = array<i64: 1, 128>}, {transform_indices = @transform_3, window_bounds = array<i64: 8, 128>}]} {
    %c0 = arith.constant 0 : index
    %c0_0 = arith.constant 0 : index
    %0 = vector.load %arg2[%c0, %c0_0] : memref<8x128xf32, #tpu.memory_space<vmem>>, vector<8x128xf32>
    %1 = arith.truncf %0 : vector<8x128xf32> to vector<8x128xbf16>
    %c0_1 = arith.constant 0 : index
    %c0_2 = arith.constant 0 : index
    %2 = vector.load %arg3[%c0_1, %c0_2] : memref<128x128xbf16, #tpu.memory_space<vmem>>, vector<128x128xbf16>
    %cst = arith.constant dense<0.000000e+00> : vector<8x128xf32>
    %3 = tpu.matmul %1, %2, %cst {dimension_numbers = #tpu.dot_dimension_numbers<[1], [0], [0], [1], [0, 0, 1, 1], [], []>} : vector<8x128xbf16>, vector<128x128xbf16>, vector<8x128xf32> -> vector<8x128xf32>
    %c0_3 = arith.constant 0 : index
    %c0_4 = arith.constant 0 : index
    %4 = vector.load %arg4[%c0_3, %c0_4] : memref<1x128xf32, #tpu.memory_space<vmem>>, vector<1x128xf32>
    %5 = vector.broadcast %4 : vector<1x128xf32> to vector<8x128xf32>
    %6 = arith.addf %3, %5 : vector<8x128xf32>
    %c0_5 = arith.constant 0 : index
    %c0_6 = arith.constant 0 : index
    %7 = vector.load %arg5[%c0_5, %c0_6] : memref<8x128xf32, #tpu.memory_space<vmem>>, vector<8x128xf32>
    tpu.vector_store %arg5[%c0_5, %c0_6], %6 {strides = array<i32>} : memref<8x128xf32, #tpu.memory_space<vmem>>, vector<8x128xf32>,
    return
  }
  func.func @transform_0(%arg0: i32, %arg1: i32) -> (i32, i32) {
    %c0_i32 = arith.constant 0 : i32
    %c0_i32_0 = arith.constant 0 : i32
    return %arg0, %c0_i32 : i32, i32
  }
  func.func @transform_1(%arg0: i32, %arg1: i32) -> (i32, i32) {
    %c0_i32 = arith.constant 0 : i32
    %c0_i32_0 = arith.constant 0 : i32
    return %c0_i32, %arg1 : i32, i32
  }
  func.func @transform_2(%arg0: i32, %arg1: i32) -> (i32, i32) {
    %c0_i32 = arith.constant 0 : i32
    %c0_i32_0 = arith.constant 0 : i32
    return %c0_i32, %arg1 : i32, i32
  }
  func.func @transform_3(%arg0: i32, %arg1: i32) -> (i32, i32) {
    %c0_i32 = arith.constant 0 : i32
    return %arg0, %arg1 : i32, i32
  }
}

</mosaic_0001>

<bundles_post_ra>
// kernel: expert_forward.1
= control target key start
LH: loop header
LB: loop body
LE: loop exit
PB: predicated region body
PF: predicated region fallthrough
CT: control target
= control target key end

     0   :  { %8 = vsyncpa [#allocation3], 0  ;;  %s315_s0 = inlined_call_operand.vmem [shape: f32[8,128], index: 0, kind: input, shape index: {}]   ;;  %s316_s1 = inlined_call_operand.hbm [shape: bf16[128,128], index: 1, kind: input, shape index: {}]   ;;  %s317_s2 = inlined_call_operand.vmem [shape: f32[1,128], index: 2, kind: input, shape index: {}]   ;;  %s318_s3 = inlined_call_operand.hbm [shape: f32[8,128], index: 3, kind: output, shape index: {}]  }
   0x1   :  { %9 = vsyncpa [#allocation4], 0  ;;  %s259_s12 = smov [#allocation2]   ;;  %s211_s16 = scalar_lea.hbm %s316_s1, 1024 }
   0x2   :  { %s17_s13 = sshll.u32 %s259_s12, 4  ;;  %p212_p0 = scmp.ne.s32.totalorder %s316_s1, %s211_s16  ;;  %s18_s13 = int_to_ptr.vmem [resolvable:$true] %s17_s13 }
   0x3   :  { %p215_p1 = scmp.lt.u32.totalorder %s211_s16, %s316_s1 }
   0x5   :  { %p217_p2 = pnand %p215_p1, %p212_p0 }
   0x7   :  { %220 = shalt.err (!%p217_p2)
}
   0x8   :  { %s221_s21 = scalar_lea.vmem %s18_s13, 1024  ;;  %p226_p4 = scmp.lt.s32.totalorder %s18_s13, %s18_s13 }
   0x9   :  { %p222_p3 = scmp.ne.s32.totalorder %s18_s13, %s221_s21  ;;  %p227_p5 = scmp.lt.s32.totalorder %s221_s21, %s221_s21 }
   0xb   :  { %p228_p6 = por %p227_p5, %p226_p4 }
   0xd   :  { %p229_p7 = pnand %p228_p6, %p222_p3 }
   0xf   :  { %232 = shalt.err (!%p229_p7)
}
  0x10   :  { %s260_s22 = smov 64   ;;  %s261_s23 = smov 4  }
  0x11   :  { %23 = dma.hbm_to_vmem [thread:$0]  %s316_s1, 1024, %s18_s13, [#allocation3], %s260_s22, %s260_s22, %s261_s23  }
  0x12   :  { %255 = dma.done.wait [#allocation3], 1024  }
  0x13   :  { %256 = vsyncadd [#allocation3], 4294966272  ;;  %v262_v0 = vmov 0.0   ;;  %vm263_vm0 = vmmov 0   ;;  %v203_v1 = vld [vmem:[#allocation2] sm:$0xff]   ;;  %v204_v2 = vld [vmem:[#allocation2 + $0x8] sm:$0xff]  }
  0x14   :  { %177 = vmatprep.subr.bf16.mxu0 %v262_v0  ;;  %193 = vmatprep.mubr.msk.bf16.mxu0 %vm263_vm0, %v262_v0  ;;  %v205_v3 = vld [vmem:[#allocation2 + $0x10] sm:$0xff]   ;;  %v206_v4 = vld [vmem:[#allocation2 + $0x18] sm:$0xff]   ;;  %v207_v5 = vld [vmem:[#allocation2 + $0x20] sm:$0xff]   ;;  %s264_s29 = smov [#allocation5]  }
  0x15   :  { %178 = vmatpush3.bf16.msra.mxu0 %v203_v1  ;;  %v208_v6 = vld [vmem:[#allocation2 + $0x28] sm:$0xff]   ;;  %v209_v7 = vld [vmem:[#allocation2 + $0x30] sm:$0xff]   ;;  %v210_v8 = vld [vmem:[#allocation2 + $0x38] sm:$0xff]   ;;  %s150_s30 = sshll.u32 %s264_s29, 4  ;;  %s151_s30 = int_to_ptr.vmem [resolvable:$true] %s150_s30 }
  0x16   :  { %179 = vmatprep.subr.bf16.mxu0 %v262_v0  ;;  %v30_v9 = vld [vmem:[%s315_s0] sm:$0xff]  ;;  %s233_s4 = scalar_lea.vmem %s151_s30, 128  ;;  %p238_p9 = scmp.lt.s32.totalorder %s151_s30, %s151_s30 }
  0x17   :  { %v31_v10 = vpack.c.bf16 %v30_v9, %v30_v9  ;;  %v159_v11 = vld [vmem:[%s317_s2] ss:$0 sm:$0xff]  ;;  %p234_p8 = scmp.ne.s32.totalorder %s151_s30, %s233_s4  ;;  %p239_p10 = scmp.lt.s32.totalorder %s233_s4, %s233_s4 }
  0x19   :  { %180 = vmatpush3.bf16.msra.mxu0 %v204_v2  ;;  %p240_p11 = por %p239_p10, %p238_p9 }
  0x1a   :  { %181 = vmatprep.subr.bf16.mxu0 %v262_v0 }
  0x1b   :  { %p241_p12 = pnand %p240_p11, %p234_p8 }
  0x1d   :  { %182 = vmatpush3.bf16.msra.mxu0 %v205_v3 }
  0x1e   :  { %183 = vmatprep.subr.bf16.mxu0 %v262_v0 }
  0x21   :  { %184 = vmatpush3.bf16.msra.mxu0 %v206_v4 }
  0x22   :  { %185 = vmatprep.subr.bf16.mxu0 %v262_v0 }
  0x25   :  { %186 = vmatpush3.bf16.msra.mxu0 %v207_v5 }
  0x26   :  { %187 = vmatprep.subr.bf16.mxu0 %v262_v0 }
  0x29   :  { %188 = vmatpush3.bf16.msra.mxu0 %v208_v6 }
  0x2a   :  { %189 = vmatprep.subr.bf16.mxu0 %v262_v0 }
  0x2d   :  { %190 = vmatpush3.bf16.msra.mxu0 %v209_v7 }
  0x2e   :  { %191 = vmatprep.subr.bf16.mxu0 %v262_v0 }
  0x31   :  { %192 = vmatpush3.bf16.msra.mxu0 %v210_v8 }
  0x34   :  { %194 = vmatmul.mubr.bf16.vlgmr.msra.gmra.mrb[0].mxu0 %v31_v10 }
 0x107   :  { %v137_v12 = vpop.f32.mrb[0].mxu0 }
 0x108   :  { %v138_v13 = vadd.f32 %v159_v11, %v137_v12  ;;  %v195_v14 = vpop.f32.mrb[1].mxu0 }
 0x109   :  { %v140_v15 = vpop.f32.mrb[2].mxu0 }
 0x10a   :  { %143 = vst [vmem:[#allocation5] sm:$0xff] %v138_v13  ;;  %v196_v16 = vpop.f32.mrb[3].mxu0 }
 0x10b   :  { %244 = shalt.err (!%p241_p12)
}
 0x10c   :  { %s245_s2 = scalar_lea.hbm %s318_s3, 128 }
 0x10d   :  { %p246_p13 = scmp.ne.s32.totalorder %s318_s3, %s245_s2  ;;  %p249_p0 = scmp.lt.u32.totalorder %s245_s2, %s318_s3 }
 0x10f   :  { %p251_p1 = pnand %p249_p0, %p246_p13 }
 0x111   :  { %254 = shalt.err (!%p251_p1)
}
 0x112   :  { %153 = dma.vmem_to_hbm [thread:$0]  %s151_s30, 128, %s318_s3, [#allocation4]  }
 0x113   :  { %257 = dma.done.wait [#allocation4], 128  }
 0x114   :  { %258 = vsyncadd [#allocation4], 4294967168 }
 0x115   :  { %157 = vsyncpa [#allocation3], 1 }
 0x116   :  { %158 = vsyncpa [#allocation4], 1 }

</bundles_post_ra>
